<compile_context>
chip_gen: v7x
topology: tpu7x:2x2x1
jax: 0.10.0
libtpu: 0.0.40
codegen_flags: <defaults>
</compile_context>

<pallas_src>
import functools

import jax
import jax.numpy as jnp
from jax.experimental import pallas as pl
from jax.experimental.pallas import tpu as pltpu


def _dwconv_kernel(K, stride, padding, H, w_ref, x_ref, o_ref, *scratch):
    """One (batch, lane-tile) step of the depthwise H-convolution.

    w_ref:   (K, L)     f32 VMEM -- per-lane taps (pre-repeated per lane).
    x_ref:   (H, L)     VMEM     -- input tile; H on sublanes, L on lanes.
    o_ref:   (H_out, L) VMEM     -- output tile.
    scratch: optionally one VMEM ref (H + 2*padding, L) for in-kernel padding.
    """
    H_out, L = o_ref.shape

    # Load the per-lane weight rows once (hoisted out of the K-tap loop).
    w = w_ref[...]                                    # (K, L) f32

    if padding > 0:
        # In-kernel padding: zero the halo rows, copy the tile into the middle.
        pad_ref, = scratch                            # (H + 2*padding, L)
        halo = jnp.zeros((padding, L), dtype=pad_ref.dtype)
        pad_ref[:padding, :] = halo
        pad_ref[padding + H:, :] = halo
        pad_ref[padding:padding + H, :] = x_ref[...]
        src = pad_ref
    else:
        src = x_ref

    acc = jnp.zeros((H_out, L), jnp.float32)
    for k in range(K):                                # K is static -> unrolled
        if stride == 1:
            xk = src[pl.ds(k, H_out), :]
        else:
            # stride > 1: sublane-strided read from the VMEM-resident tile
            # (rows k, k+s, ..., k+(H_out-1)*s); hidden under the HBM roofline.
            xk = src[pl.ds(k, H_out, stride=stride), :]
        acc = acc + xk.astype(jnp.float32) * w[k:k + 1, :]

    o_ref[...] = acc.astype(o_ref.dtype)


def _pick_lane_tile(CW, H, H_pad, H_out, in_bytes, out_bytes, K,
                    vmem_budget=10 * 1024 * 1024):
    """Largest lane tile (multiple of 128 when tiling) keeping the
    double-buffered input/output blocks + padded staging scratch under a
    conservative VMEM budget that fits v5e / v6e / v7x."""
    if CW <= 256:
        return CW                          # whole lane axis in one block
    per_lane = (2 * H * in_bytes           # double-buffered input block
                + 2 * H_out * out_bytes    # double-buffered output block
                + H_pad * in_bytes         # in-kernel padded staging scratch
                + 2 * K * 4)               # weight rows
    lanes = vmem_budget // max(per_lane, 1)
    lanes = max(128, min(lanes, CW))
    return (lanes // 128) * 128


def conv_f_lane_major(xt, w_rows, *, stride=1, padding=0, lane_tile=None):
    """Depthwise H-conv on lane-major data.

    xt:     (N, H, CW)   -- x with channels*width fused onto the lane axis.
    w_rows: (K, CW) f32  -- w_rows[k, c*W + w] = weight[c, k].
    Returns (N, H_out, CW) in xt.dtype.
    """
    N, H, CW = xt.shape
    K, CWw = w_rows.shape
    assert CWw == CW
    w_rows = w_rows.astype(jnp.float32)

    H_pad = H + 2 * padding
    H_out = (H_pad - K) // stride + 1
    assert H_out >= 1, "output height must be positive"

    in_b = jnp.dtype(xt.dtype).itemsize
    out_b = in_b
    if lane_tile is None:
        lane_tile = _pick_lane_tile(CW, H, H_pad, H_out, in_b, out_b, K)
    n_lane = pl.cdiv(CW, lane_tile)

    # TODO(synk): for extremely tall inputs (H so large that even a 128-lane
    # block exceeds VMEM) the H axis should be tiled with a (K-1)-row halo via
    # a manual double-buffered DMA; not needed for ConvF-sized inputs.

    est_vmem = lane_tile * (2 * H * in_b + 2 * H_out * out_b
                            + (H_pad * in_b if padding > 0 else 0)
                            + 2 * K * 4)
    cp = dict(dimension_semantics=("parallel", "parallel"))
    if est_vmem > 12 * 1024 * 1024:
        # Larger-than-default blocks: raise the scoped-VMEM limit explicitly
        # (v5e default is only 16 MiB), with headroom but below v7x physical.
        cp["vmem_limit_bytes"] = min(int(est_vmem * 1.4), 96 * 1024 * 1024)

    kernel = functools.partial(_dwconv_kernel, K, stride, padding, H)
    scratch_shapes = ([pltpu.VMEM((H_pad, lane_tile), xt.dtype)]
                      if padding > 0 else [])

    return pl.pallas_call(
        kernel,
        out_shape=jax.ShapeDtypeStruct((N, H_out, CW), xt.dtype),
        grid_spec=pltpu.PrefetchScalarGridSpec(
            num_scalar_prefetch=0,
            grid=(N, n_lane),
            in_specs=[
                pl.BlockSpec((K, lane_tile), lambda n, j: (0, j)),
                pl.BlockSpec((None, H, lane_tile), lambda n, j: (n, 0, j)),
            ],
            out_specs=pl.BlockSpec((None, H_out, lane_tile),
                                   lambda n, j: (n, 0, j)),
            scratch_shapes=scratch_shapes,
        ),
        compiler_params=pltpu.CompilerParams(**cp),
    )(w_rows, xt)


def conv_f(x, weight, *, stride=1, padding=0, lane_tile=None):
    """Forward of ConvF on NCHW data (PyTorch layout).

    x:      (N, C, H, W)
    weight: (C, K) -- squeezed from PyTorch's (C, 1, K, 1)
    Returns (N, C, H_out, W), H_out = (H + 2*padding - K)//stride + 1.
    """
    N, C, H, W = x.shape
    Cw, K = weight.shape
    assert Cw == C, "depthwise conv: weight channels must match input channels"

    # Layout plumbing (one XLA transpose each way).  In a full model the
    # activations would stay in this lane-major (N, H, C*W) layout so the
    # transposes amortize away across layers.
    xt = jnp.transpose(x, (0, 2, 1, 3)).reshape(N, H, C * W)
    # Per-lane weight rows: lane l = c*W + w  ->  weight[c, k].
    w_rows = jnp.repeat(weight.astype(jnp.float32), W, axis=0).T   # (K, C*W)

    out_t = conv_f_lane_major(xt, w_rows, stride=stride, padding=padding,
                              lane_tile=lane_tile)
    H_out = out_t.shape[1]
    return out_t.reshape(N, H_out, C, W).transpose(0, 2, 1, 3)


def _reference(x, weight, stride, padding):
    C = x.shape[1]
    K = weight.shape[1]
    w4 = weight.reshape(C, 1, K, 1).astype(jnp.float32)
    return jax.lax.conv_general_dilated(
        x.astype(jnp.float32), w4,
        window_strides=(stride, 1),
        padding=((padding, padding), (0, 0)),
        dimension_numbers=("NCHW", "OIHW", "NCHW"),
        feature_group_count=C,
        precision=jax.lax.Precision.HIGHEST)


if __name__ == "__main__":
    key = jax.random.PRNGKey(0)

    def run_case(N, C, H, W, K, stride, padding, dtype=jnp.float32,
                 lane_tile=None, atol=1e-5, rtol=1e-5):
        kx, kw = jax.random.split(
            jax.random.fold_in(key, N * 100000 + C * 1000 + H * 10 + W + K))
        x = jax.random.normal(kx, (N, C, H, W), dtype=jnp.float32).astype(dtype)
        weight = 0.1 * jax.random.normal(kw, (C, K), dtype=jnp.float32)

        out = jax.block_until_ready(
            conv_f(x, weight, stride=stride, padding=padding,
                   lane_tile=lane_tile))

        ref = _reference(x, weight, stride, padding)
        H_out = (H + 2 * padding - K) // stride + 1
        assert out.shape == (N, C, H_out, W), (out.shape, (N, C, H_out, W))
        assert jnp.allclose(out.astype(jnp.float32), ref, atol=atol,
                            rtol=rtol), \
            f"mismatch for case {(N, C, H, W, K, stride, padding, dtype)}"

    # The module's example configuration: ConvF(4, 3, stride=1, padding=1).
    run_case(2, 4, 16, 16, K=3, stride=1, padding=1)
    # Lane-dense block (C*W = 256).
    run_case(2, 16, 32, 16, K=3, stride=1, padding=1)
    # No padding, odd sizes, K=5 (exercises the unpadded fast path).
    run_case(2, 5, 19, 24, K=5, stride=1, padding=0)
    # Multiple lane tiles per image (explicit lane_tile -> grid (N, 3)).
    run_case(1, 48, 24, 16, K=3, stride=1, padding=1, lane_tile=256)
    # bf16 I/O with f32 accumulation inside the kernel.
    run_case(2, 8, 16, 16, K=3, stride=1, padding=1, dtype=jnp.bfloat16,
             atol=1e-2, rtol=2e-2)

    print("KERNEL_OK")
</pallas_src>

<mosaic_0001>
module attributes {stable_mosaic.version = 11 : i64} {
  func.func @_dwconv_kernel(%arg0: i32, %arg1: i32, %arg2: memref<3x64xf32, #tpu.memory_space<vmem>>, %arg3: memref<1x16x64xf32, #tpu.memory_space<vmem>>, %arg4: memref<1x16x64xf32, #tpu.memory_space<vmem>>, %arg5: memref<18x64xf32, #tpu.memory_space<vmem>>) attributes {dimension_semantics = [#tpu.dimension_semantics<parallel>, #tpu.dimension_semantics<parallel>], iteration_bounds = array<i64: 2, 1>, scalar_prefetch = 0 : i64, scratch_operands = 1 : i64, tpu.core_type = #tpu.core_type<tc>, window_params = [{transform_indices = @transform_0, window_bounds = array<i64: 3, 64>}, {transform_indices = @transform_1, window_bounds = array<i64: 1, 16, 64>}, {transform_indices = @transform_2, window_bounds = array<i64: 1, 16, 64>}]} {
    %c0 = arith.constant 0 : index
    %c0_0 = arith.constant 0 : index
    %0 = vector.load %arg2[%c0, %c0_0] : memref<3x64xf32, #tpu.memory_space<vmem>>, vector<3x64xf32>
    %cst = arith.constant 0.000000e+00 : f32
    %1 = vector.broadcast %cst : f32 to vector<1x64xf32>
    %c0_1 = arith.constant 0 : index
    %c0_2 = arith.constant 0 : index
    %2 = vector.load %arg5[%c0_1, %c0_2] : memref<18x64xf32, #tpu.memory_space<vmem>>, vector<1x64xf32>
    tpu.vector_store %arg5[%c0_1, %c0_2], %1 {strides = array<i32>} : memref<18x64xf32, #tpu.memory_space<vmem>>, vector<1x64xf32>,
    %c17 = arith.constant 17 : index
    %c0_3 = arith.constant 0 : index
    %3 = vector.load %arg5[%c17, %c0_3] : memref<18x64xf32, #tpu.memory_space<vmem>>, vector<1x64xf32>
    tpu.vector_store %arg5[%c17, %c0_3], %1 {strides = array<i32>} : memref<18x64xf32, #tpu.memory_space<vmem>>, vector<1x64xf32>,
    %c0_4 = arith.constant 0 : index
    %c0_5 = arith.constant 0 : index
    %c0_6 = arith.constant 0 : index
    %4 = vector.load %arg3[%c0_4, %c0_5, %c0_6] : memref<1x16x64xf32, #tpu.memory_space<vmem>>, vector<1x16x64xf32>
    %5 = vector.shape_cast %4 : vector<1x16x64xf32> to vector<16x64xf32>
    %c1 = arith.constant 1 : index
    %c0_7 = arith.constant 0 : index
    %6 = vector.load %arg5[%c1, %c0_7] : memref<18x64xf32, #tpu.memory_space<vmem>>, vector<16x64xf32>
    tpu.vector_store %arg5[%c1, %c0_7], %5 {strides = array<i32>} : memref<18x64xf32, #tpu.memory_space<vmem>>, vector<16x64xf32>,
    %cst_8 = arith.constant 0.000000e+00 : f32
    %7 = vector.broadcast %cst_8 : f32 to vector<16x64xf32>
    %c0_9 = arith.constant 0 : index
    %c0_10 = arith.constant 0 : index
    %8 = vector.load %arg5[%c0_9, %c0_10] : memref<18x64xf32, #tpu.memory_space<vmem>>, vector<16x64xf32>
    %9 = vector.extract_strided_slice %0 {offsets = [0, 0], sizes = [1, 64], strides = [1, 1]} : vector<3x64xf32> to vector<1x64xf32>
    %10 = vector.broadcast %9 : vector<1x64xf32> to vector<16x64xf32>
    %11 = arith.mulf %8, %10 : vector<16x64xf32>
    %12 = arith.addf %7, %11 : vector<16x64xf32>
    %c1_11 = arith.constant 1 : index
    %c0_12 = arith.constant 0 : index
    %13 = vector.load %arg5[%c1_11, %c0_12] : memref<18x64xf32, #tpu.memory_space<vmem>>, vector<16x64xf32>
    %14 = vector.extract_strided_slice %0 {offsets = [1, 0], sizes = [1, 64], strides = [1, 1]} : vector<3x64xf32> to vector<1x64xf32>
    %15 = vector.broadcast %14 : vector<1x64xf32> to vector<16x64xf32>
    %16 = arith.mulf %13, %15 : vector<16x64xf32>
    %17 = arith.addf %12, %16 : vector<16x64xf32>
    %c2 = arith.constant 2 : index
    %c0_13 = arith.constant 0 : index
    %18 = vector.load %arg5[%c2, %c0_13] : memref<18x64xf32, #tpu.memory_space<vmem>>, vector<16x64xf32>
    %19 = vector.extract_strided_slice %0 {offsets = [2, 0], sizes = [1, 64], strides = [1, 1]} : vector<3x64xf32> to vector<1x64xf32>
    %20 = vector.broadcast %19 : vector<1x64xf32> to vector<16x64xf32>
    %21 = arith.mulf %18, %20 : vector<16x64xf32>
    %22 = arith.addf %17, %21 : vector<16x64xf32>
    %c0_14 = arith.constant 0 : index
    %c0_15 = arith.constant 0 : index
    %c0_16 = arith.constant 0 : index
    %23 = vector.load %arg4[%c0_14, %c0_15, %c0_16] : memref<1x16x64xf32, #tpu.memory_space<vmem>>, vector<1x16x64xf32>
    %24 = vector.shape_cast %23 : vector<1x16x64xf32> to vector<16x64xf32>
    %25 = vector.shape_cast %22 : vector<16x64xf32> to vector<1x16x64xf32>
    tpu.vector_store %arg4[%c0_14, %c0_15, %c0_16], %25 {strides = array<i32>} : memref<1x16x64xf32, #tpu.memory_space<vmem>>, vector<1x16x64xf32>,
    return
  }
  func.func @transform_0(%arg0: i32, %arg1: i32) -> (i32, i32) {
    %c0_i32 = arith.constant 0 : i32
    %c0_i32_0 = arith.constant 0 : i32
    return %c0_i32, %arg1 : i32, i32
  }
  func.func @transform_1(%arg0: i32, %arg1: i32) -> (i32, i32, i32) {
    %c0_i32 = arith.constant 0 : i32
    %c0_i32_0 = arith.constant 0 : i32
    return %arg0, %c0_i32, %arg1 : i32, i32, i32
  }
  func.func @transform_2(%arg0: i32, %arg1: i32) -> (i32, i32, i32) {
    %c0_i32 = arith.constant 0 : i32
    %c0_i32_0 = arith.constant 0 : i32
    return %arg0, %c0_i32, %arg1 : i32, i32, i32
  }
}

</mosaic_0001>

<bundles_post_ra>
// kernel: tpu_custom_call.1
= control target key start
LH: loop header
LB: loop body
LE: loop exit
PB: predicated region body
PF: predicated region fallthrough
CT: control target
= control target key end

     0   :  { %7 = vsyncpa [#allocation4], 0  ;;  %s849_s0 = inlined_call_operand.hbm [shape: f32[3,64], index: 0, kind: input, shape index: {}]   ;;  %s850_s1 = inlined_call_operand.hbm [shape: f32[2,16,64], index: 1, kind: input, shape index: {}]   ;;  %s851_s2 = inlined_call_operand.hbm [shape: f32[2,16,64], index: 2, kind: output, shape index: {}]  }
   0x1   :  { %8 = vsyncpa [#allocation7], 0 }
   0x2   :  { %10 = vsyncpa [#allocation7 + $0x1], 0 }
   0x3   :  { %11 = vsyncpa [#allocation5], 0 }
   0x4   :  { %13 = vsyncpa [#allocation5 + $0x1], 0  ;;  %s620_s9 = smov 0   ;;  %s622_s10 = smov 0  }
   0x5   :  { %s624_s11 = smov 0   ;;  %s626_s12 = smov 0  }
   0x6   :  { %s628_s13 = smov 0   ;;  %s630_s14 = smov 0  }
   0x7 LB: > { %s354_s15 = sadd.s32 4294967295, %s595_s14   ;;  %s355_s16 = sadd.s32 4294967294, %s595_s14   ;;  %s595_s14 = sphi %s630_s14, %s19_s14   ;;  %s591_s13 = sphi %s628_s13, %s879_s13   ;;  %s587_s12 = sphi %s626_s12, %s878_s12   ;;  %s583_s11 = sphi %s624_s11, %s877_s11   ;;  %s579_s10 = sphi %s622_s10, %s876_s10   ;;  %s575_s9 = sphi %s620_s9, %s875_s9  }
   0x8   : > { %s66_s17 = sadd.s32 1, %s583_s11  ;;  %p73_p0 = scmp.ne.s32.totalorder %s583_s11, %s579_s10 }
   0x9   : > { %p74_p1 = scmp.eq.s32.totalorder %s595_s14, 0  ;;  %p79_p2 = scmp.ne.s32.totalorder %s579_s10, %s575_s9 }
   0xa   : > { %p658_p3 = scmp.eq.s32.totalorder %s354_s15, 0  ;;  %p105_p4 = scmp.eq.s32.totalorder %s354_s15, 1 }
   0xb   : > { %p662_p5 = por %p74_p1, %p73_p0  ;;  %p111_p6 = scmp.eq.s32.totalorder %s355_s16, 1 }
   0xc   : > { %s858_s18 = scalar_select %p658_p3, 1, 0 }
   0xd   : > { %p668_p7 = por %p658_p3, %p79_p2  ;;  %p672_p8 = por %p105_p4, %p73_p0 }
   0xe   : > { %p676_p9 = por %p111_p6, %p79_p2  ;;  %p356_p10 = scmp.ge.s32.totalorder %s595_s14, 1 }
   0xf   : > { %s860_s20 = scalar_select %p668_p7, 1, 0 }
  0x10   : > { %s861_s21 = scalar_select %p672_p8, 1, 0 }
  0x11   : > { %s862_s22 = scalar_select %p676_p9, 1, 0 }
  0x12   : > { %p118_p11 = scmp.lt.s32.totalorder %s595_s14, 3  ;;  %s597_s24 = smov [#allocation3]  }
  0x13   : > { %s133_s25 = sshll.u32 %s597_s24, 4  ;;  %p394_p1 = scmp.lt.s32.totalorder %s595_s14, 2  ;;  %s134_s25 = int_to_ptr.vmem [resolvable:$true] %s133_s25 }
  0x14   : > { %p683_p13 = pnand %p356_p10, %p118_p11  ;;  %s31_s28 = sadd.s32 1, %s591_s13 }
  0x15   : > { %p692_p4 = pnand %p394_p1, %p662_p5  ;;  %p703_p6 = scmp.ge.s32.totalorder %s31_s28, 2 }
  0x16   : > { %s863_s23 = scalar_select %p683_p13, 1, 0 }
  0x17   : > { %p381_p0 = pneg %p683_p13  ;;  %s144_s30 = sand.u32 1, %s583_s11  }
  0x18   : > { %s864_s26 = scalar_select %p692_p4, 1, 0 }
  0x19   : > { %p698_p2 = pnand %p381_p0, %p658_p3  ;;  %s451_s5 = scalar_lea.hbm %s849_s0, 64 }
  0x1a   : > { %s866_s29 = scalar_select %p703_p6, 1, 0 }
  0x1b   : > { %p452_p5 = scmp.ne.s32.totalorder %s849_s0, %s451_s5  ;;  %p453_p10 = pneg %p698_p2 }
  0x1c   : > { %p458_p0 = scmp.lt.u32.totalorder %s451_s5, %s849_s0 }
  0x1d   : > { %p454_p11 = pnand %p453_p10, %p452_p5 }
  0x1f   : > { %p455_p1 = pneg %p454_p11 }
  0x21   : > { %p460_p12 = pnand %p458_p0, %p455_p1 }
  0x23   : > { %463 = shalt.err (!%p460_p12)
}
  0x24   : > { %s464_s16 = scalar_lea.vmem %s134_s25, 64  ;;  %p472_p3 = scmp.lt.s32.totalorder %s134_s25, %s134_s25 }
  0x25   : > { %p465_p9 = scmp.ne.s32.totalorder %s134_s25, %s464_s16  ;;  %p473_p13 = scmp.lt.s32.totalorder %s464_s16, %s464_s16 }
  0x27   : > { %p467_p8 = pnand %p465_p9, %p453_p10  ;;  %p474_p4 = por %p473_p13, %p472_p3 }
  0x29   : > { %p468_p7 = pneg %p467_p8 }
  0x2b   : > { %p475_p6 = pnand %p474_p4, %p468_p7 }
  0x2d   : > { %478 = shalt.err (!%p475_p6)
}
  0x2e   : > { %384 = dma.hbm_to_vmem [thread:$0]  (!%p698_p2), %s849_s0, 64, %s134_s25, [#allocation4]  }
  0x2f   : > { %p867_p9 = scmp.ne.s32.totalorder %s866_s29, 0  ;;  %s359_s3 = sshll.u32 %s144_s30, 4 }
  0x30   : > { %s371_s5 = sshll.u32 %s591_s13, 8  ;;  %s148_s8 = scalar_lea.vmem [#allocation6], %s359_s3 }
  0x31   : > { %s881_s28 = smov (%p867_p9, %s31_s28), 0  ;;  %s734_s7 = scalar_lea.hbm %s850_s1, %s371_s5 }
  0x32   : > { %s61_s4 = ssub.s32 %s591_s13, %s881_s28  ;;  %s156_s15 = sshll.u32 %s148_s8, 4  ;;  %s741_s15 = int_to_ptr.vmem [resolvable:$true] %s156_s15 }
  0x33   : > { %p64_p3 = scmp.eq.s32.totalorder %s61_s4, 0  ;;  %s743_s29 = scalar_lea.sflag [#allocation7], %s144_s30 }
  0x34   : > { %s479_s16 = scalar_lea.hbm %s734_s7, 256  ;;  %p868_p8 = scmp.ne.s32.totalorder %s864_s26, 0 }
  0x35   : > { %s739_s25 = scalar_select %p64_p3, %s583_s11, %s66_s17  }
  0x36   : > { %p480_p7 = scmp.ne.s32.totalorder %s734_s7, %s479_s16  ;;  %p481_p12 = pneg %p868_p8 }
  0x37   : > { %s484_s3 = scalar_lea.hbm %s850_s1, 512  ;;  %p485_p2 = scmp.lt.u32.totalorder %s734_s7, %s850_s1 }
  0x38   : > { %p482_p13 = pnand %p481_p12, %p480_p7  ;;  %p486_p6 = scmp.lt.u32.totalorder %s484_s3, %s479_s16 }
  0x39   : > { %p488_p10 = scmp.lt.u32.totalorder %s479_s16, %s734_s7 }
  0x3a   : > { %p483_p4 = pneg %p482_p13  ;;  %p487_p5 = por %p486_p6, %p485_p2 }
  0x3c   : > { %p489_p11 = por %p488_p10, %p487_p5 }
  0x3e   : > { %p490_p1 = pnand %p489_p11, %p483_p4 }
  0x40   : > { %493 = shalt.err (!%p490_p1)
}
  0x41   : > { %s494_s17 = scalar_lea.vmem %s741_s15, 256  ;;  %s598_s30 = smov [#allocation6]  }
  0x42   : > { %p495_p0 = scmp.ne.s32.totalorder %s741_s15, %s494_s17  ;;  %s499_s27 = sshll.u32 %s598_s30, 4  ;;  %s500_s27 = int_to_ptr.vmem [resolvable:$false] %s499_s27 }
  0x43   : > { %s501_s6 = scalar_lea.vmem %s500_s27, 512  ;;  %p502_p7 = scmp.lt.s32.totalorder %s741_s15, %s500_s27 }
  0x44   : > { %p497_p9 = pnand %p495_p0, %p481_p12  ;;  %p503_p13 = scmp.lt.s32.totalorder %s501_s6, %s494_s17 }
  0x46   : > { %p498_p3 = pneg %p497_p9  ;;  %p504_p2 = por %p503_p13, %p502_p7 }
  0x48   : > { %p505_p6 = pnand %p504_p2, %p498_p3 }
  0x4a   : > { %508 = shalt.err (!%p505_p6)
}
  0x4b   : > { %s599_s8 = smov 128   ;;  %s600_s16 = smov 8  }
  0x4c   : > { %388 = dma.hbm_to_vmem [thread:$0]  (!%p868_p8), %s734_s7, 256, %s741_s15, %s743_s29, %s599_s8, %s599_s8, %s600_s16  }
  0x4d   : > { %p869_p12 = scmp.ne.s32.totalorder %s863_s23, 0 }
  0x4e   : > { %p870_p4 = scmp.ne.s32.totalorder (!%p869_p12), %s858_s18, 0 }
  0x4f   : > { %168 = sbr.rel (%p869_p12) target bundleno = 123 (0x7b), region = 28 }
  0x56   : > { %562 = dma.done.wait (%p870_p4), [#allocation4], 64  }
  0x57   : > { %564 = vsyncadd (%p870_p4), [#allocation4], 4294967232  ;;  %s778_s19 = sand.u32 1, %s579_s10   ;;  %p871_p8 = scmp.ne.s32.totalorder %s860_s20, 0 }
  0x58   : > { %s364_s24 = sshll.u32 %s778_s19, 4  ;;  %s175_s3 = scalar_lea.sflag [#allocation7], %s778_s19 }
  0x59   : > { %s178_s26 = scalar_lea.vmem [#allocation6], %s364_s24 }
  0x5a   : > { %566 = dma.done.wait (%p871_p8), %s175_s3, 256  }
  0x5b   : > { %568 = vsyncadd (%p871_p8), %s175_s3, 4294967040  ;;  %vm200_vm0 = vcmask 516096   ;;  %v210_v0 = vlaneseq  ;;  %v601_v1 = vmov 0.0   ;;  %vm205_vm1 = vcmask 523264   ;;  %v203_v3 = vld [vmem:[%s178_s26] sm:$0xff]  ;;  %v204_v4 = vld [vmem:[%s178_s26 + $0x8] sm:$0xff] }
  0x5c   : > { %201 = vst.msk [vmem:[#allocation2] sm:$0x1] %vm200_vm0, %v601_v1  ;;  %202 = vst.msk [vmem:[#allocation2 + $0x11] sm:$0x1] %vm200_vm0, %v601_v1  ;;  %v199_v7 = vld [vmem:[#allocation3] sm:$0x7] }
  0x5d   : > { %v211_v2 = vshrl.u32 %v210_v0, 7  ;;  %206 = vst.msk [vmem:[#allocation2 + $0x1] sm:$0xff] %vm205_vm1, %v203_v3  ;;  %207 = vst.msk [vmem:[#allocation2 + $0x9] sm:$0xff] %vm205_vm1, %v204_v4  ;;  %s198_s18 = scalar_lea.vmem [#allocation8], %s364_s24  ;;  %s372_s23 = sshll.u32 %s587_s12, 8 }
  0x5e   : > { %s255_s20 = sshll.u32 %s198_s18, 4  ;;  %s798_s29 = scalar_lea.hbm %s851_s2, %s372_s23  ;;  %s793_s20 = int_to_ptr.vmem [resolvable:$true] %s255_s20 }
  0x5f   : > { %v212_v5 = vsub.s32 0, %v211_v2  ;;  %v222_v6 = vsub.s32 1, %v211_v2  ;;  %v232_v8 = vsub.s32 2, %v211_v2  ;;  %s241_s12 = scalar_lea.sflag [#allocation5], %s778_s19  ;;  %s509_s4 = scalar_lea.vmem %s793_s20, 256 }
  0x60   : > { %p510_p5 = scmp.ne.s32.totalorder %s793_s20, %s509_s4  ;;  %p872_p10 = scmp.ne.s32.totalorder %s861_s21, 0 }
  0x61   : > { %v213_v9 = vrot.slane %v199_v7, %v212_v5  ;;  %v223_v10 = vrot.slane %v199_v7, %v222_v6  ;;  %v233_v11 = vrot.slane %v199_v7, %v232_v8  ;;  %s602_s5 = smov [#allocation8]  }
  0x62   : > { %p511_p11 = pnand %p510_p5, %p872_p10  ;;  %s513_s17 = sshll.u32 %s602_s5, 4  ;;  %s514_s17 = int_to_ptr.vmem [resolvable:$false] %s513_s17 }
  0x63   : > { %s515_s30 = scalar_lea.vmem %s514_s17, 512  ;;  %p516_p0 = scmp.lt.s32.totalorder %s793_s20, %s514_s17 }
  0x64   : > { %v208_v12 = vld [vmem:[#allocation2] sm:$0xff]  ;;  %v209_v17 = vld [vmem:[#allocation2 + $0x8] sm:$0xff]  ;;  %p512_p1 = pneg %p511_p11  ;;  %p517_p9 = scmp.lt.s32.totalorder %s515_s30, %s509_s4 }
  0x65   : > { %v218_v13 = vld [vmem:[#allocation2 + $0x1] sm:$0xff]  ;;  %v214_v15 = vmul.f32 %v213_v9, %v208_v12  ;;  %v219_v18 = vld [vmem:[#allocation2 + $0x9] sm:$0xff]  ;;  %v215_v20 = vmul.f32 %v213_v9, %v209_v17 }
  0x66   : > { %v228_v14 = vld [vmem:[#allocation2 + $0x2] sm:$0xff]  ;;  %v224_v16 = vmul.f32 %v223_v10, %v218_v13  ;;  %v229_v19 = vld [vmem:[#allocation2 + $0xa] sm:$0xff]  ;;  %v225_v21 = vmul.f32 %v223_v10, %v219_v18  ;;  %p518_p3 = por %p517_p9, %p516_p0 }
  0x67   : > { %v234_v23 = vmul.f32 %v233_v11, %v228_v14  ;;  %v235_v25 = vmul.f32 %v233_v11, %v229_v19 }
  0x68   : > { %v226_v22 = vadd.f32 %v224_v16, %v214_v15  ;;  %v227_v24 = vadd.f32 %v225_v21, %v215_v20  ;;  %p519_p7 = pnand %p518_p3, %p512_p1 }
  0x6a   : > { %v236_v26 = vadd.f32 %v234_v23, %v226_v22  ;;  %v237_v27 = vadd.f32 %v235_v25, %v227_v24 }
  0x6c   : > { %238 = vst.msk [vmem:[%s198_s18] sm:$0xff] %vm205_vm1, %v236_v26  ;;  %239 = vst.msk [vmem:[%s198_s18 + $0x8] sm:$0xff] %vm205_vm1, %v237_v27 }
  0x6d   : > { %522 = shalt.err (!%p519_p7)
}
  0x6e   : > { %s523_s27 = scalar_lea.hbm %s798_s29, 256  ;;  %s527_s16 = scalar_lea.hbm %s851_s2, 512 }
  0x6f   : > { %p524_p13 = scmp.ne.s32.totalorder %s798_s29, %s523_s27  ;;  %p528_p12 = scmp.lt.u32.totalorder %s798_s29, %s851_s2 }
  0x70   : > { %p529_p4 = scmp.lt.u32.totalorder %s527_s16, %s523_s27  ;;  %p531_p5 = scmp.lt.u32.totalorder %s523_s27, %s798_s29 }
  0x71   : > { %p525_p2 = pnand %p524_p13, %p872_p10 }
  0x72   : > { %p530_p8 = por %p529_p4, %p528_p12 }
  0x73   : > { %p526_p6 = pneg %p525_p2 }
  0x74   : > { %p532_p11 = por %p531_p5, %p530_p8 }
  0x76   : > { %p533_p1 = pnand %p532_p11, %p526_p6 }
  0x78   : > { %536 = shalt.err (!%p533_p1)
}
  0x79   : > { %s603_s26 = smov 128   ;;  %s604_s18 = smov 8  }
  0x7a   : > { %379 = dma.vmem_to_hbm [thread:$0]  (%p872_p10), %s793_s20, 256, %s798_s29, %s241_s12, %s603_s26, %s603_s26, %s604_s18  }
  0x7b PF: > { %s270_s23 = sand.u32 1, %s575_s9   ;;  %p873_p0 = scmp.ne.s32.totalorder %s862_s22, 0 }
  0x7c   : > { %p874_p9 = scmp.ge.s32.totalorder %s595_s14, 2  ;;  %s271_s7 = scalar_lea.sflag [#allocation5], %s270_s23 }
  0x7e   : > { %p390_p3 = pnand %p874_p9, %p873_p0 }
  0x80   : > { %570 = dma.done.wait (!%p390_p3), %s271_s7, 256  }
  0x81   : > { %572 = vsyncadd (!%p390_p3), %s271_s7, 4294967040  ;;  %s19_s14 = sadd.s32 1, %s595_s14   ;;  %s875_s9 = smov %s579_s10 }
  0x82   : > { %p16_p7 = scmp.ge.s32.totalorder %s19_s14, 4   ;;  %s876_s10 = smov %s583_s11 }
  0x83   : > { %s877_s11 = smov %s739_s25  ;;  %s878_s12 = smov %s591_s13 }
  0x84   : > { %s879_s13 = smov %s881_s28  ;;  %18 = sbr.rel (!%p16_p7) target bundleno = 7 (0x7), region = 79 }
  0x8b   :  { %276 = vsyncpa [#allocation4], 1 }
  0x8c   :  { %278 = vsyncpa [#allocation4 + $0x1], 1 }
  0x8d   :  { %279 = vsyncpa [#allocation7], 1 }
  0x8e   :  { %281 = vsyncpa [#allocation7 + $0x1], 1 }
  0x8f   :  { %282 = vsyncpa [#allocation5], 1 }
  0x90   :  { %284 = vsyncpa [#allocation5 + $0x1], 1 }

</bundles_post_ra>
